<compile_context>
chip_gen: v6e
topology: v6e:2x2x1
jax: 0.10.0
libtpu: 0.0.40
codegen_flags: <defaults>
</compile_context>

<pallas_src>
import functools

import jax
import jax.numpy as jnp
from jax.experimental import pallas as pl
from jax.experimental.pallas import tpu as pltpu


def _round_up(x, m):
    return ((x + m - 1) // m) * m


def _pad2(a, rows, cols):
    return jnp.pad(a, ((0, rows - a.shape[0]), (0, cols - a.shape[1])))


def _choose_tiles(n, tile_n_req, tile_k_req):
    """(tile_n, tile_k, n_pad) with tile_n | n_pad, tile_k | n_pad,
    tile_n a multiple of 16 (bf16 sublane pack), tile_k a multiple of 128."""
    pow2 = (16, 32, 64, 128, 256, 512)
    n16 = _round_up(max(n, 1), 16)
    tile_n = max(t for t in pow2 if t <= max(16, min(tile_n_req, n16)))
    # Prefer >= 2 dest-row tiles so the "parallel" axis can shard across v7x's 2 TCs.
    if tile_n > 16 and _round_up(n, tile_n) // tile_n < 2:
        tile_n //= 2
    align = max(128, tile_n)          # src tile must be a multiple of 128 and of tile_n
    n_pad = _round_up(n, align)
    tile_k = align
    for m in range(min(max(tile_k_req, align), n_pad) // align, 0, -1):
        if n_pad % (m * align) == 0:  # largest multiple of `align` <= req that divides n_pad
            tile_k = m * align
            break
    return tile_n, tile_k, n_pad


# ----------------------------------------------------------------------------- kernels
def _mlp_kernel(x_ref, w1_ref, b1_ref, w2_ref, b2_ref, o_ref, *, apply_relu_out):
    """Per row-tile: relu(x @ w1 + b1) @ w2 + b2.  BN folded into w1/b1.
    apply_relu_out: the module's optional pre-conv relu, hoisted into this epilogue."""
    h = jnp.dot(x_ref[...], w1_ref[...], preferred_element_type=jnp.float32) + b1_ref[...]
    # TODO(synk): Dropout / BatchNorm batch-stats are training-mode only; eval-mode
    # semantics (identity dropout, running-stats BN folded into the linear) implemented.
    h = jnp.maximum(h, 0.0)
    out = jnp.dot(h, w2_ref[...], preferred_element_type=jnp.float32) + b2_ref[...]
    if apply_relu_out:
        out = jnp.maximum(out, 0.0)
    o_ref[...] = out.astype(o_ref.dtype)


def _graphconv_kernel(a_ref, h_ref, w_ref, b_ref, o_ref, acc_ref, *, apply_relu_out):
    """One GraphConv: accumulate A_tile @ h_tile (bf16 x bf16 -> f32) over the src
    axis, then @ Wc + bc in the epilogue.  apply_relu_out = relu for the *next*
    prop step, hoisted here (only for non-final steps)."""
    k = pl.program_id(1)

    @pl.when(k == 0)
    def _():
        acc_ref[...] = jnp.zeros_like(acc_ref)

    acc_ref[...] += jnp.dot(a_ref[...], h_ref[...], preferred_element_type=jnp.float32)

    @pl.when(k == pl.num_programs(1) - 1)
    def _():
        out = jnp.dot(acc_ref[...], w_ref[...],
                      preferred_element_type=jnp.float32) + b_ref[...]
        if apply_relu_out:
            out = jnp.maximum(out, 0.0)
        o_ref[...] = out.astype(o_ref.dtype)


# ----------------------------------------------------------------------------- wrapper
def gcn_with_mlp_forward(x, a_norm, params, *, prop_step=2, relu=False,
                         tile_n=256, tile_k=1024, bn_eps=1e-5):
    """x: [N, in_feats], a_norm: [N, N] dense normalized adjacency. Returns [N, h_feats] f32."""
    n, in_feats = x.shape
    h_feats = params["w_mlp1"].shape[0]

    tile_n, tile_k, n_pad = _choose_tiles(n, tile_n, tile_k)
    f_pad = _round_up(in_feats, 128)
    h_pad = _round_up(h_feats, 128)

    # Chip-aware scoped-VMEM limit (v5e default scoped limit is only 16 MiB;
    # v7x physical VMEM is 64 MiB, so stay at half of capacity there).
    try:
        vmem_cap = int(pltpu.get_tpu_info().vmem_capacity_bytes)
    except Exception:
        vmem_cap = 128 * 1024 * 1024
    vmem_limit = int(min(64 * 1024 * 1024, vmem_cap // 2))

    # ---- pad inputs; padding is exact: zero adjacency columns contribute nothing ----
    x_p = _pad2(x.astype(jnp.float32), n_pad, f_pad)
    a_p = _pad2(a_norm.astype(jnp.float32), n_pad, n_pad).astype(jnp.bfloat16)

    # ---- fold eval-mode BN into the first linear; pre-transpose; pad feature dims ----
    scale = params["bn_gamma"] / jnp.sqrt(params["bn_var"] + bn_eps)               # [H]
    w1f = _pad2((params["w_mlp1"] * scale[:, None]).T.astype(jnp.float32),
                f_pad, h_pad)                                                       # [F_pad, H_pad]
    b1f = _pad2(((params["b_mlp1"] - params["bn_mean"]) * scale
                 + params["bn_beta"]).reshape(1, h_feats).astype(jnp.float32),
                1, h_pad)                                                           # [1, H_pad]
    w2 = _pad2(params["w_mlp2"].T.astype(jnp.float32), h_pad, h_pad)
    b2 = _pad2(params["b_mlp2"].reshape(1, h_feats).astype(jnp.float32), 1, h_pad)
    wc = _pad2(params["w_conv"].astype(jnp.float32), h_pad, h_pad)                  # h @ Wc
    bc = _pad2(params["b_conv"].reshape(1, h_feats).astype(jnp.float32), 1, h_pad)

    full = lambda shape: pl.BlockSpec(shape, lambda *_: (0,) * len(shape))

    # ---- stage 1: MLP encoder, row-tiled; optional relu hoisted into the epilogue ----
    h = pl.pallas_call(
        functools.partial(_mlp_kernel, apply_relu_out=bool(relu and prop_step > 0)),
        out_shape=jax.ShapeDtypeStruct((n_pad, h_pad), jnp.bfloat16),
        grid=(n_pad // tile_n,),
        in_specs=[
            pl.BlockSpec((tile_n, f_pad), lambda i: (i, 0)),
            full((f_pad, h_pad)),
            full((1, h_pad)),
            full((h_pad, h_pad)),
            full((1, h_pad)),
        ],
        out_specs=pl.BlockSpec((tile_n, h_pad), lambda i: (i, 0)),
        compiler_params=pltpu.CompilerParams(
            dimension_semantics=("parallel",), vmem_limit_bytes=vmem_limit),
    )(x_p, w1f, b1f, w2, b2)

    # ---- stage 2: prop_step x GraphConv, grid = (dest tiles, src tiles) ----
    # TODO(synk): for genuinely sparse graphs, prefetch a nonzero-tile table via
    # pltpu.PrefetchScalarGridSpec and skip empty A tiles instead of dense A @ h.
    def make_conv(apply_relu_out):
        cost = pl.CostEstimate(
            flops=2 * n_pad * n_pad * h_pad + 2 * n_pad * h_pad * h_pad,
            transcendentals=0,
            bytes_accessed=2 * n_pad * n_pad + 4 * n_pad * h_pad
                           + 4 * (h_pad * h_pad + h_pad),
        )
        return pl.pallas_call(
            functools.partial(_graphconv_kernel, apply_relu_out=apply_relu_out),
            out_shape=jax.ShapeDtypeStruct((n_pad, h_pad), jnp.bfloat16),
            grid=(n_pad // tile_n, n_pad // tile_k),
            in_specs=[
                pl.BlockSpec((tile_n, tile_k), lambda i, k: (i, k)),    # A tile (bf16)
                pl.BlockSpec((tile_k, h_pad), lambda i, k: (k, 0)),     # h src rows (bf16)
                full((h_pad, h_pad)),                                   # Wc (f32)
                full((1, h_pad)),                                       # bc (f32)
            ],
            out_specs=pl.BlockSpec((tile_n, h_pad), lambda i, k: (i, 0)),
            scratch_shapes=[pltpu.VMEM((tile_n, h_pad), jnp.float32)],
            compiler_params=pltpu.CompilerParams(
                dimension_semantics=("parallel", "arbitrary"),
                vmem_limit_bytes=vmem_limit),
            cost_estimate=cost,
        )

    conv_last = make_conv(False)
    conv_mid = make_conv(True) if (relu and prop_step > 1) else conv_last
    for step in range(prop_step):
        conv = conv_mid if (relu and step < prop_step - 1) else conv_last
        h = conv(a_p, h, wc, bc)

    return h[:n, :h_feats].astype(jnp.float32)


# ----------------------------------------------------------------------------- reference
def _reference(x, a_norm, params, *, prop_step=2, relu=False, bn_eps=1e-5):
    h = x @ params["w_mlp1"].T + params["b_mlp1"]
    h = ((h - params["bn_mean"]) / jnp.sqrt(params["bn_var"] + bn_eps)
         * params["bn_gamma"] + params["bn_beta"])
    h = jnp.maximum(h, 0.0)
    h = h @ params["w_mlp2"].T + params["b_mlp2"]
    for _ in range(prop_step):
        if relu:
            h = jnp.maximum(h, 0.0)
        h = a_norm @ h @ params["w_conv"] + params["b_conv"]
    return h


# ----------------------------------------------------------------------------- demo
if __name__ == "__main__":
    N, F_IN, H = 64, 16, 32          # nodes, in_feats, h_feats
    PROP_STEP = 2

    key = jax.random.PRNGKey(0)
    ks = jax.random.split(key, 12)
    bnd1, bnd2 = 1.0 / jnp.sqrt(F_IN), 1.0 / jnp.sqrt(H)

    params = {
        "w_mlp1": jax.random.uniform(ks[0], (H, F_IN), jnp.float32, -bnd1, bnd1),
        "b_mlp1": jax.random.uniform(ks[1], (H,), jnp.float32, -bnd1, bnd1),
        "bn_gamma": jax.random.uniform(ks[2], (H,), jnp.float32, 0.5, 1.5),
        "bn_beta": jax.random.uniform(ks[3], (H,), jnp.float32, -0.5, 0.5),
        "bn_mean": jax.random.uniform(ks[4], (H,), jnp.float32, -0.5, 0.5),
        "bn_var": jax.random.uniform(ks[5], (H,), jnp.float32, 0.5, 1.5),
        "w_mlp2": jax.random.uniform(ks[6], (H, H), jnp.float32, -bnd2, bnd2),
        "b_mlp2": jax.random.uniform(ks[7], (H,), jnp.float32, -bnd2, bnd2),
        "w_conv": jax.random.uniform(ks[8], (H, H), jnp.float32, -bnd2, bnd2),
        "b_conv": jax.random.uniform(ks[9], (H,), jnp.float32, -bnd2, bnd2),
    }

    # Random undirected graph -> symmetrically normalized dense adjacency (DGL norm='both').
    u = jax.random.uniform(ks[10], (N, N), jnp.float32)
    adj = (u < 0.15).astype(jnp.float32)
    adj = jnp.maximum(adj, adj.T) * (1.0 - jnp.eye(N, dtype=jnp.float32))
    deg = jnp.clip(adj.sum(axis=1), 1.0, None)
    dinv = deg ** -0.5
    a_norm = adj * dinv[:, None] * dinv[None, :]

    in_feat = jax.random.normal(ks[11], (N, F_IN), jnp.float32)

    ok = True
    for use_relu in (False, True):
        out = gcn_with_mlp_forward(in_feat, a_norm, params,
                                   prop_step=PROP_STEP, relu=use_relu)
        jax.block_until_ready(out)
        ref = _reference(in_feat, a_norm, params, prop_step=PROP_STEP, relu=use_relu)
        assert out.shape == (N, H), out.shape
        # bf16 A/h streaming (f32 accumulation) -> loosened tolerance vs. f32 reference.
        ok &= bool(jnp.allclose(out, ref, atol=5e-2, rtol=5e-2))

    assert ok
    print("KERNEL_OK")
</pallas_src>

<mosaic_0001>
module attributes {stable_mosaic.version = 11 : i64} {
  func.func @_mlp_kernel(%arg0: i32, %arg1: memref<32x128xf32, #tpu.memory_space<vmem>>, %arg2: memref<128x128xf32, #tpu.memory_space<vmem>>, %arg3: memref<1x128xf32, #tpu.memory_space<vmem>>, %arg4: memref<128x128xf32, #tpu.memory_space<vmem>>, %arg5: memref<1x128xf32, #tpu.memory_space<vmem>>, %arg6: memref<32x128xbf16, #tpu.memory_space<vmem>>) attributes {dimension_semantics = [#tpu.dimension_semantics<parallel>], iteration_bounds = array<i64: 4>, scalar_prefetch = 0 : i64, scratch_operands = 0 : i64, tpu.core_type = #tpu.core_type<tc>, window_params = [{transform_indices = @transform_0, window_bounds = array<i64: 32, 128>}, {pipeline_mode = #tpu.pipeline_mode<synchronous>, transform_indices = @transform_1, window_bounds = array<i64: 128, 128>}, {pipeline_mode = #tpu.pipeline_mode<synchronous>, transform_indices = @transform_2, window_bounds = array<i64: 1, 128>}, {pipeline_mode = #tpu.pipeline_mode<synchronous>, transform_indices = @transform_3, window_bounds = array<i64: 128, 128>}, {pipeline_mode = #tpu.pipeline_mode<synchronous>, transform_indices = @transform_4, window_bounds = array<i64: 1, 128>}, {transform_indices = @transform_5, window_bounds = array<i64: 32, 128>}]} {
    %c0 = arith.constant 0 : index
    %c0_0 = arith.constant 0 : index
    %0 = vector.load %arg1[%c0, %c0_0] : memref<32x128xf32, #tpu.memory_space<vmem>>, vector<32x128xf32>
    %c0_1 = arith.constant 0 : index
    %c0_2 = arith.constant 0 : index
    %1 = vector.load %arg2[%c0_1, %c0_2] : memref<128x128xf32, #tpu.memory_space<vmem>>, vector<128x128xf32>
    %cst = arith.constant dense<0.000000e+00> : vector<32x128xf32>
    %2 = tpu.matmul %0, %1, %cst {dimension_numbers = #tpu.dot_dimension_numbers<[1], [0], [0], [1], [0, 0, 1, 1], [], []>} : vector<32x128xf32>, vector<128x128xf32>, vector<32x128xf32> -> vector<32x128xf32>
    %c0_3 = arith.constant 0 : index
    %c0_4 = arith.constant 0 : index
    %3 = vector.load %arg3[%c0_3, %c0_4] : memref<1x128xf32, #tpu.memory_space<vmem>>, vector<1x128xf32>
    %4 = vector.broadcast %3 : vector<1x128xf32> to vector<32x128xf32>
    %5 = arith.addf %2, %4 : vector<32x128xf32>
    %cst_5 = arith.constant 0.000000e+00 : f32
    %6 = vector.broadcast %cst_5 : f32 to vector<32x128xf32>
    %7 = arith.maximumf %5, %6 : vector<32x128xf32>
    %c0_6 = arith.constant 0 : index
    %c0_7 = arith.constant 0 : index
    %8 = vector.load %arg4[%c0_6, %c0_7] : memref<128x128xf32, #tpu.memory_space<vmem>>, vector<128x128xf32>
    %cst_8 = arith.constant dense<0.000000e+00> : vector<32x128xf32>
    %9 = tpu.matmul %7, %8, %cst_8 {dimension_numbers = #tpu.dot_dimension_numbers<[1], [0], [0], [1], [0, 0, 1, 1], [], []>} : vector<32x128xf32>, vector<128x128xf32>, vector<32x128xf32> -> vector<32x128xf32>
    %c0_9 = arith.constant 0 : index
    %c0_10 = arith.constant 0 : index
    %10 = vector.load %arg5[%c0_9, %c0_10] : memref<1x128xf32, #tpu.memory_space<vmem>>, vector<1x128xf32>
    %11 = vector.broadcast %10 : vector<1x128xf32> to vector<32x128xf32>
    %12 = arith.addf %9, %11 : vector<32x128xf32>
    %13 = arith.truncf %12 : vector<32x128xf32> to vector<32x128xbf16>
    %c0_11 = arith.constant 0 : index
    %c0_12 = arith.constant 0 : index
    %14 = vector.load %arg6[%c0_11, %c0_12] : memref<32x128xbf16, #tpu.memory_space<vmem>>, vector<32x128xbf16>
    tpu.vector_store %arg6[%c0_11, %c0_12], %13 {strides = array<i32>} : memref<32x128xbf16, #tpu.memory_space<vmem>>, vector<32x128xbf16>,
    return
  }
  func.func @transform_0(%arg0: i32) -> (i32, i32) {
    %c0_i32 = arith.constant 0 : i32
    %c0_i32_0 = arith.constant 0 : i32
    return %arg0, %c0_i32 : i32, i32
  }
  func.func @transform_1(%arg0: i32) -> (i32, i32) {
    %c0_i32 = arith.constant 0 : i32
    %c0_i32_0 = arith.constant 0 : i32
    %c0_i32_1 = arith.constant 0 : i32
    return %c0_i32, %c0_i32_0 : i32, i32
  }
  func.func @transform_2(%arg0: i32) -> (i32, i32) {
    %c0_i32 = arith.constant 0 : i32
    %c0_i32_0 = arith.constant 0 : i32
    %c0_i32_1 = arith.constant 0 : i32
    return %c0_i32, %c0_i32_0 : i32, i32
  }
  func.func @transform_3(%arg0: i32) -> (i32, i32) {
    %c0_i32 = arith.constant 0 : i32
    %c0_i32_0 = arith.constant 0 : i32
    %c0_i32_1 = arith.constant 0 : i32
    return %c0_i32, %c0_i32_0 : i32, i32
  }
  func.func @transform_4(%arg0: i32) -> (i32, i32) {
    %c0_i32 = arith.constant 0 : i32
    %c0_i32_0 = arith.constant 0 : i32
    %c0_i32_1 = arith.constant 0 : i32
    return %c0_i32, %c0_i32_0 : i32, i32
  }
  func.func @transform_5(%arg0: i32) -> (i32, i32) {
    %c0_i32 = arith.constant 0 : i32
    %c0_i32_0 = arith.constant 0 : i32
    return %arg0, %c0_i32 : i32, i32
  }
}

</mosaic_0001>

<bundles_post_ra>
// kernel: tpu_custom_call.1
= control target key start
LH: loop header
LB: loop body
LE: loop exit
PB: predicated region body
PF: predicated region fallthrough
CT: control target
= control target key end

     0   :  { %10 = vsyncpa [#allocation3], 0  ;;  %s1248_s0 = inlined_call_operand.hbm [shape: f32[128,128], index: 0, kind: input, shape index: {}]   ;;  %s1249_s1 = inlined_call_operand.hbm [shape: f32[128,128], index: 1, kind: input, shape index: {}]   ;;  %s1250_s2 = inlined_call_operand.vmem [shape: f32[1,128], index: 2, kind: input, shape index: {}]   ;;  %s1251_s3 = inlined_call_operand.hbm [shape: f32[128,128], index: 3, kind: input, shape index: {}]   ;;  %s1252_s4 = inlined_call_operand.vmem [shape: f32[1,128], index: 4, kind: input, shape index: {}]   ;;  %s1253_s5 = inlined_call_operand.hbm [shape: bf16[128,128], index: 5, kind: output, shape index: {}]  }
   0x1   :  { %12 = vsyncpa [#allocation3 + $0x1], 0 }
   0x2   :  { %13 = vsyncpa [#allocation6], 0 }
   0x3   :  { %14 = vsyncpa [#allocation4], 0 }
   0x4   :  { %16 = vsyncpa [#allocation4 + $0x1], 0  ;;  %s1040_s18 = smov 0   ;;  %s1042_s19 = smov 0  }
   0x5   :  { %s1044_s20 = smov 0   ;;  %s1046_s21 = smov 0  }
   0x6 LB: > { %s1061_s22 = sadd.s32 4294967295, %s1000_s21   ;;  %s624_s23 = sadd.s32 4294967294, %s1000_s21   ;;  %s1000_s21 = sphi %s1046_s21, %s1275_s21   ;;  %s996_s20 = sphi %s1044_s20, %s1274_s20   ;;  %s992_s19 = sphi %s1042_s19, %s1273_s19   ;;  %s988_s18 = sphi %s1040_s18, %s1272_s18  }
   0x7   : > { %p42_p0 = scmp.ne.s32.totalorder %s992_s19, %s988_s18  ;;  %p1254_p1 = scmp.eq.s32.totalorder %s1061_s22, 0 }
   0x8   : > { %p150_p2 = scmp.eq.s32.totalorder %s1061_s22, 3  ;;  %p156_p3 = scmp.eq.s32.totalorder %s624_s23, 3 }
   0x9   : > { %p1070_p4 = por %p1254_p1, %p42_p0  ;;  %p625_p5 = scmp.ge.s32.totalorder %s1000_s21, 1 }
   0xa   : > { %p1075_p6 = por %p156_p3, %p42_p0  ;;  %p163_p7 = scmp.lt.s32.totalorder %s1000_s21, 5 }
   0xb   : > { %s1259_s24 = scalar_select %p1070_p4, 1, 0 }
   0xc   : > { %s1260_s25 = scalar_select %p1075_p6, 1, 0 }
   0xd   : > { %p1080_p8 = pnand %p625_p5, %p163_p7  ;;  %s1002_s27 = smov [#allocation5]  }
   0xe   : > { %s175_s28 = sshll.u32 %s1002_s27, 4  ;;  %s1003_s30 = smov [#allocation7]   ;;  %s176_s28 = int_to_ptr.vmem [resolvable:$true] %s175_s28 }
   0xf   : > { %s1261_s26 = scalar_select %p1080_p8, 1, 0 }
  0x10   : > { %p793_p9 = pneg %p1080_p8  ;;  %s191_s6 = sshll.u32 %s1003_s30, 4  ;;  %s192_s6 = int_to_ptr.vmem [resolvable:$true] %s191_s6 }
  0x11   : > { %s863_s7 = scalar_lea.vmem %s176_s28, 2048  ;;  %p871_p3 = scmp.lt.s32.totalorder %s176_s28, %s176_s28 }
  0x12   : > { %p1088_p10 = pnand %p793_p9, %p1254_p1  ;;  %p864_p12 = scmp.ne.s32.totalorder %s176_s28, %s863_s7 }
  0x13   : > { %p872_p5 = scmp.lt.s32.totalorder %s863_s7, %s863_s7 }
  0x14   : > { %p854_p11 = pneg %p1088_p10 }
  0x15   : > { %p873_p7 = por %p872_p5, %p871_p3 }
  0x16   : > { %p866_p13 = pnand %p864_p12, %p854_p11 }
  0x18   : > { %p867_p0 = pneg %p866_p13 }
  0x1a   : > { %p874_p9 = pnand %p873_p7, %p867_p0 }
  0x1c   : > { %877 = shalt.err (!%p874_p9)
}
  0x1d   : > { %s1255_s8 = smov 128   ;;  %s1005_s9 = smov 8  }
  0x1e   : > { %796 = dma.hbm_to_vmem [thread:$0]  (!%p1088_p10), %s1249_s1, 2048, %s176_s28, [#allocation6], %s1255_s8, %s1255_s8, %s1005_s9  }
  0x1f   : > { %s889_s12 = scalar_lea.vmem %s192_s6, 2048  ;;  %p897_p0 = scmp.lt.s32.totalorder %s192_s6, %s192_s6 }
  0x20   : > { %p890_p12 = scmp.ne.s32.totalorder %s192_s6, %s889_s12  ;;  %p898_p5 = scmp.lt.s32.totalorder %s889_s12, %s889_s12 }
  0x22   : > { %p892_p13 = pnand %p890_p12, %p854_p11  ;;  %p899_p7 = por %p898_p5, %p897_p0 }
  0x24   : > { %p893_p3 = pneg %p892_p13 }
  0x26   : > { %p900_p9 = pnand %p899_p7, %p893_p3 }
  0x28   : > { %903 = shalt.err (!%p900_p9)
}
  0x29   : > { %799 = dma.hbm_to_vmem [thread:$0]  (!%p1088_p10), %s1251_s3, 2048, %s192_s6, [#allocation6], %s1255_s8, %s1255_s8, %s1005_s9  }
  0x2a   : > { %s1117_s15 = sadd.s32 1, %s1000_s21   ;;  %s29_s16 = sadd.s32 1, %s996_s20 }
  0x2b   : > { %s26_s17 = ssub.s32 %s1000_s21, %s1117_s15  ;;  %p36_p11 = scmp.ne.s32.totalorder %s996_s20, %s992_s19 }
  0x2c   : > { %p27_p12 = scmp.eq.s32.totalorder %s26_s17, 0  ;;  %p37_p13 = scmp.eq.s32.totalorder %s1000_s21, 0 }
  0x2d   : > { %p1127_p3 = por %p150_p2, %p36_p11  ;;  %p810_p0 = scmp.lt.s32.totalorder %s1000_s21, 4 }
  0x2e   : > { %s1133_s27 = scalar_select %p27_p12, %s996_s20, %s29_s16  }
  0x2f   : > { %s1263_s23 = scalar_select %p1127_p3, 1, 0 }
  0x30   : > { %p38_p5 = por %p37_p13, %p36_p11  ;;  %s208_s28 = sand.u32 1, %s996_s20  }
  0x31   : > { %s629_s29 = sshll.u32 %s208_s28, 5  ;;  %s648_s30 = sshll.u32 %s1000_s21, 9 }
  0x32   : > { %s1140_s10 = scalar_lea.hbm %s1248_s0, %s648_s30  ;;  %s212_s11 = scalar_lea.vmem [#allocation2], %s629_s29 }
  0x33   : > { %s219_s12 = sshll.u32 %s212_s11, 4  ;;  %p1144_p2 = pnand %p810_p0, %p38_p5  ;;  %s1142_s12 = int_to_ptr.vmem [resolvable:$true] %s219_s12 }
  0x34   : > { %s1148_s14 = scalar_lea.sflag [#allocation3], %s208_s28  ;;  %s904_s16 = scalar_lea.hbm %s1140_s10, 512 }
  0x35   : > { %p905_p10 = scmp.ne.s32.totalorder %s1140_s10, %s904_s16  ;;  %p906_p7 = pneg %p1144_p2 }
  0x36   : > { %s909_s29 = scalar_lea.hbm %s1248_s0, 2048  ;;  %p910_p12 = scmp.lt.s32.totalorder %s1140_s10, %s1248_s0 }
  0x37   : > { %p907_p9 = pnand %p906_p7, %p905_p10  ;;  %p911_p13 = scmp.lt.s32.totalorder %s909_s29, %s904_s16 }
  0x39   : > { %p908_p11 = pneg %p907_p9  ;;  %p912_p0 = por %p911_p13, %p910_p12 }
  0x3b   : > { %p913_p5 = pnand %p912_p0, %p908_p11 }
  0x3d   : > { %916 = shalt.err (!%p913_p5)
}
  0x3e   : > { %s917_s28 = scalar_lea.vmem %s1142_s12, 512  ;;  %s1006_s11 = smov [#allocation2]  }
  0x3f   : > { %p918_p1 = scmp.ne.s32.totalorder %s1142_s12, %s917_s28  ;;  %s922_s8 = sshll.u32 %s1006_s11, 4  ;;  %s923_s8 = int_to_ptr.vmem [resolvable:$false] %s922_s8 }
  0x40   : > { %s924_s17 = scalar_lea.vmem %s923_s8, 1024  ;;  %p925_p9 = scmp.lt.s32.totalorder %s1142_s12, %s923_s8 }
  0x41   : > { %p920_p6 = pnand %p918_p1, %p906_p7  ;;  %p926_p3 = scmp.lt.s32.totalorder %s924_s17, %s917_s28 }
  0x43   : > { %p921_p10 = pneg %p920_p6  ;;  %p927_p4 = por %p926_p3, %p925_p9 }
  0x45   : > { %p928_p8 = pnand %p927_p4, %p921_p10 }
  0x47   : > { %931 = shalt.err (!%p928_p8)
}
  0x48   : > { %s1265_s16 = smov 128   ;;  %p1266_p1 = scmp.ne.s32.totalorder %s1261_s26, 0 }
  0x49   : > { %803 = dma.hbm_to_vmem [thread:$0]  (!%p1144_p2), %s1140_s10, 512, %s1142_s12, %s1148_s14, %s1265_s16, %s1265_s16, %s1005_s9  }
  0x4a   : > { %231 = sbr.rel (%p1266_p1) target bundleno = 533 (0x215), region = 40  ;;  %s1175_s30 = sand.u32 (!%p1266_p1), 1, %s992_s19  }
  0x4b   : > { %s633_s8 = sshll.u32 (!%p1266_p1), %s1175_s30, 5  ;;  %s234_s29 = scalar_lea.sflag (!%p1266_p1), [#allocation3], %s1175_s30 }
  0x4c   : > { %s1179_s6 = scalar_lea.vmem (!%p1266_p1), [#allocation2], %s633_s8  ;;  %p1267_p4 = scmp.ne.s32.totalorder (!%p1266_p1), %s1259_s24, 0 }
  0x4f   : > { %975 = dma.done.wait (%p1267_p4), %s234_s29, 512  }
  0x50   : > { %977 = vsyncadd (%p1267_p4), %s234_s29, 4294966784  ;;  %p1268_p6 = scmp.eq.s32.totalorder %s1061_s22, 0 }
  0x52   : > { %979 = dma.done.wait (%p1268_p6), [#allocation6], 4096   ;;  %p1269_p8 = pmov %p1268_p6 }
  0x53   : > { %v293_v0 = vld [vmem:[#allocation5 + $0x78] sm:$0xff]  ;;  %v292_v1 = vld [vmem:[#allocation5 + $0x70] sm:$0xff]  ;;  %v291_v2 = vld [vmem:[#allocation5 + $0x68] sm:$0xff]  ;;  %s636_s12 = sshll.u32 %s1175_s30, 4  ;;  %s653_s7 = sshll.u32 %s1061_s22, 8 }
  0x54   : > { %981 = vsyncadd (%p1269_p8), [#allocation6], 4294963200  ;;  %705 = vmatprep.subr.mxu0 %v293_v0  ;;  %v290_v3 = vld [vmem:[#allocation5 + $0x60] sm:$0xff]  ;;  %v289_v5 = vld [vmem:[#allocation5 + $0x58] sm:$0xff]  ;;  %s271_s13 = scalar_lea.vmem [#allocation8], %s636_s12  ;;  %s1206_s17 = scalar_lea.hbm %s1253_s5, %s653_s7 }
  0x55   : > { %706 = vmatpush3.msra.mxu0 %v293_v0  ;;  %v274_v4 = vld [vmem:[%s1179_s6] sm:$0xff]  ;;  %v405_v6 = vld [vmem:[#allocation7 + $0x78] sm:$0xff]  ;;  %v404_v7 = vld [vmem:[#allocation7 + $0x70] sm:$0xff]  ;;  %s532_s14 = sshll.u32 %s271_s13, 4  ;;  %s519_s16 = scalar_lea.sflag [#allocation4], %s1175_s30  ;;  %s1201_s14 = int_to_ptr.vmem [resolvable:$true] %s532_s14 }
  0x56   : > { %707 = vmatprep.subr.mxu0 %v292_v1  ;;  %737 = vmatprep.mubr.f32.mxu0 %v274_v4  ;;  %v288_v8 = vld [vmem:[#allocation5 + $0x50] sm:$0xff]  ;;  %v403_v9 = vld [vmem:[#allocation7 + $0x68] sm:$0xff]  ;;  %v402_v11 = vld [vmem:[#allocation7 + $0x60] sm:$0xff]  ;;  %s932_s8 = scalar_lea.vmem %s1201_s14, 256  ;;  %p1270_p2 = scmp.ne.s32.totalorder %s1263_s23, 0 }
  0x57   : > { %708 = vmatpush3.msra.mxu0 %v292_v1  ;;  %743 = vmatprep.subr.mxu1 %v405_v6  ;;  %v287_v10 = vld [vmem:[#allocation5 + $0x48] sm:$0xff]  ;;  %v286_v12 = vld [vmem:[#allocation5 + $0x40] sm:$0xff]  ;;  %v401_v13 = vld [vmem:[#allocation7 + $0x58] sm:$0xff]  ;;  %p933_p3 = scmp.ne.s32.totalorder %s1201_s14, %s932_s8  ;;  %s1007_s22 = smov [#allocation8]  }
  0x58   : > { %709 = vmatprep.subr.mxu0 %v291_v2  ;;  %744 = vmatpush3.msra.mxu1 %v405_v6  ;;  %v285_v14 = vld [vmem:[#allocation5 + $0x38] sm:$0xff]  ;;  %v400_v15 = vld [vmem:[#allocation7 + $0x50] sm:$0xff]  ;;  %v399_v17 = vld [vmem:[#allocation7 + $0x48] sm:$0xff]  ;;  %s936_s29 = sshll.u32 %s1007_s22, 4  ;;  %s937_s29 = int_to_ptr.vmem [resolvable:$false] %s936_s29 }
  0x59   : > { %710 = vmatpush3.msra.mxu0 %v291_v2  ;;  %745 = vmatprep.subr.mxu1 %v404_v7  ;;  %v284_v16 = vld [vmem:[#allocation5 + $0x30] sm:$0xff]  ;;  %v283_v18 = vld [vmem:[#allocation5 + $0x28] sm:$0xff]  ;;  %v398_v19 = vld [vmem:[#allocation7 + $0x40] sm:$0xff]  ;;  %p934_p7 = pnand %p933_p3, %p1270_p2  ;;  %p939_p12 = scmp.lt.s32.totalorder %s1201_s14, %s937_s29 }
  0x5a   : > { %711 = vmatprep.subr.mxu0 %v290_v3  ;;  %746 = vmatpush3.msra.mxu1 %v404_v7  ;;  %v282_v20 = vld [vmem:[#allocation5 + $0x20] sm:$0xff]  ;;  %v397_v21 = vld [vmem:[#allocation7 + $0x38] sm:$0xff]  ;;  %v396_v23 = vld [vmem:[#allocation7 + $0x30] sm:$0xff] }
  0x5b   : > { %712 = vmatpush3.msra.mxu0 %v290_v3  ;;  %747 = vmatprep.subr.mxu1 %v403_v9  ;;  %v281_v22 = vld [vmem:[#allocation5 + $0x18] sm:$0xff]  ;;  %v280_v24 = vld [vmem:[#allocation5 + $0x10] sm:$0xff]  ;;  %v395_v25 = vld [vmem:[#allocation7 + $0x28] sm:$0xff]  ;;  %p935_p11 = pneg %p934_p7 }
  0x5c   : > { %713 = vmatprep.subr.mxu0 %v289_v5  ;;  %748 = vmatpush3.msra.mxu1 %v403_v9  ;;  %v279_v26 = vld [vmem:[#allocation5 + $0x8] sm:$0xff]  ;;  %v394_v27 = vld [vmem:[#allocation7 + $0x20] sm:$0xff]  ;;  %v276_v30 = vld [vmem:[%s1179_s6 + $0x10] sm:$0xff] }
  0x5d   : > { %714 = vmatpush3.msra.mxu0 %v289_v5  ;;  %749 = vmatprep.subr.mxu1 %v402_v11  ;;  %v278_v28 = vld [vmem:[#allocation5] sm:$0xff]  ;;  %v275_v29 = vld [vmem:[%s1179_s6 + $0x8] sm:$0xff]  ;;  %v277_v31 = vld [vmem:[%s1179_s6 + $0x18] sm:$0xff]  ;;  %s938_s6 = scalar_lea.vmem %s937_s29, 512 }
  0x5e   : > { %715 = vmatprep.subr.mxu0 %v288_v8  ;;  %750 = vmatpush3.msra.mxu1 %v402_v11  ;;  %v393_v32 = vld [vmem:[#allocation7 + $0x18] sm:$0xff]  ;;  %v392_v33 = vld [vmem:[#allocation7 + $0x10] sm:$0xff]  ;;  %v391_v34 = vld [vmem:[#allocation7 + $0x8] sm:$0xff]  ;;  %p940_p13 = scmp.lt.s32.totalorder %s938_s6, %s932_s8 }
  0x5f   : > { %716 = vmatpush3.msra.mxu0 %v288_v8  ;;  %751 = vmatprep.subr.mxu1 %v401_v13  ;;  %v390_v35 = vld [vmem:[#allocation7] sm:$0xff] }
  0x60   : > { %717 = vmatprep.subr.mxu0 %v287_v10  ;;  %752 = vmatpush3.msra.mxu1 %v401_v13  ;;  %v637_v36 = vld [vmem:[%s1250_s2] ss:$0 sm:$0xff]  ;;  %p941_p0 = por %p940_p13, %p939_p12 }
  0x61   : > { %718 = vmatpush3.msra.mxu0 %v287_v10  ;;  %753 = vmatprep.subr.mxu1 %v400_v15  ;;  %v638_v50 = vld [vmem:[%s1252_s4] ss:$0 sm:$0xff] }
  0x62   : > { %719 = vmatprep.subr.mxu0 %v286_v12  ;;  %754 = vmatpush3.msra.mxu1 %v400_v15  ;;  %p942_p5 = pnand %p941_p0, %p935_p11 }
  0x63   : > { %720 = vmatpush3.msra.mxu0 %v286_v12  ;;  %755 = vmatprep.subr.mxu1 %v399_v17 }
  0x64   : > { %721 = vmatprep.subr.mxu0 %v285_v14  ;;  %756 = vmatpush3.msra.mxu1 %v399_v17 }
  0x65   : > { %722 = vmatpush3.msra.mxu0 %v285_v14  ;;  %757 = vmatprep.subr.mxu1 %v398_v19 }
  0x66   : > { %723 = vmatprep.subr.mxu0 %v284_v16  ;;  %758 = vmatpush3.msra.mxu1 %v398_v19 }
  0x67   : > { %724 = vmatpush3.msra.mxu0 %v284_v16  ;;  %759 = vmatprep.subr.mxu1 %v397_v21 }
  0x68   : > { %725 = vmatprep.subr.mxu0 %v283_v18  ;;  %760 = vmatpush3.msra.mxu1 %v397_v21 }
  0x69   : > { %726 = vmatpush3.msra.mxu0 %v283_v18  ;;  %761 = vmatprep.subr.mxu1 %v396_v23 }
  0x6a   : > { %727 = vmatprep.subr.mxu0 %v282_v20  ;;  %762 = vmatpush3.msra.mxu1 %v396_v23 }
  0x6b   : > { %728 = vmatpush3.msra.mxu0 %v282_v20  ;;  %763 = vmatprep.subr.mxu1 %v395_v25 }
  0x6c   : > { %729 = vmatprep.subr.mxu0 %v281_v22  ;;  %764 = vmatpush3.msra.mxu1 %v395_v25 }
  0x6d   : > { %730 = vmatpush3.msra.mxu0 %v281_v22  ;;  %765 = vmatprep.subr.mxu1 %v394_v27 }
  0x6e   : > { %731 = vmatprep.subr.mxu0 %v280_v24  ;;  %766 = vmatpush3.msra.mxu1 %v394_v27 }
  0x6f   : > { %732 = vmatpush3.msra.mxu0 %v280_v24  ;;  %767 = vmatprep.subr.mxu1 %v393_v32 }
  0x70   : > { %733 = vmatprep.subr.mxu0 %v279_v26  ;;  %768 = vmatpush3.msra.mxu1 %v393_v32 }
  0x71   : > { %734 = vmatpush3.msra.mxu0 %v279_v26  ;;  %769 = vmatprep.subr.mxu1 %v392_v33 }
  0x72   : > { %735 = vmatprep.subr.mxu0 %v278_v28  ;;  %770 = vmatpush3.msra.mxu1 %v392_v33 }
  0x73   : > { %736 = vmatpush3.msra.mxu0 %v278_v28  ;;  %771 = vmatprep.subr.mxu1 %v391_v34 }
  0x74   : > { %738 = vmatmul.mubr.f32.vlgmr.msra.gmra.mxu0 %v275_v29  ;;  %772 = vmatpush3.msra.mxu1 %v391_v34 }
  0x75   : > { %740 = vmatprep.mubr.f32.mxu0 %v276_v30  ;;  %773 = vmatprep.subr.mxu1 %v390_v35 }
  0x76   : > { %774 = vmatpush3.msra.mxu1 %v390_v35 }
  0x78   : > { %741 = vmatmul.mubr.f32.gmra.mxu0 %v277_v31 }
 0x134   : > { %v739_v37 = vpop.f32.mrf.mxu0 }
 0x135   : > { %v373_v38 = vadd.f32 %v739_v37, %v637_v36 }
 0x136   : > { %v367_v39 = vpop.f32.mrf.mxu0 }
 0x137   : > { %v368_v40 = vadd.f32 %v637_v36, %v367_v39  ;;  %v387_v43 = vmax.f32 %v373_v38, 0.0 }
 0x138   : > { %v742_v41 = vpop.f32.mrf.mxu0 }
 0x139   : > { %v386_v42 = vmax.f32 %v368_v40, 0.0  ;;  %v383_v44 = vadd.f32 %v742_v41, %v637_v36 }
 0x13a   : > { %v377_v45 = vpop.f32.mrf.mxu0 }
 0x13b   : > { %v378_v46 = vadd.f32 %v637_v36, %v377_v45  ;;  %775 = vmatprep.mubr.f32.mxu1 %v386_v42  ;;  %v389_v48 = vmax.f32 %v383_v44, 0.0 }
 0x13c   : > { %776 = vmatmul.mubr.f32.vlgmr.msra.gmra.mxu1 %v387_v43 }
 0x13d   : > { %v388_v47 = vmax.f32 %v378_v46, 0.0 }
 0x13f   : > { %778 = vmatprep.mubr.f32.mxu1 %v388_v47 }
 0x140   : > { %779 = vmatmul.mubr.f32.gmra.mxu1 %v389_v48 }
 0x1fc   : > { %v777_v49 = vpop.f32.mrf.mxu1 }
 0x1fd   : > { %v485_v52 = vadd.f32 %v777_v49, %v638_v50 }
 0x1fe   : > { %v479_v51 = vpop.f32.mrf.mxu1 }
 0x1ff   : > { %v480_v53 = vadd.f32 %v638_v50, %v479_v51 }
 0x200   : > { %v780_v54 = vpop.f32.mrf.mxu1 }
 0x201   : > { %v657_v55 = vpack.c.bf16 %v485_v52, %v480_v53  ;;  %v495_v57 = vadd.f32 %v780_v54, %v638_v50 }
 0x202   : > { %v489_v56 = vpop.f32.mrf.mxu1 }
 0x203   : > { %658 = vst [vmem:[%s271_s13] sm:$0xff] %v657_v55   ;;  %v490_v58 = vadd.f32 %v638_v50, %v489_v56 }
 0x205   : > { %v662_v59 = vpack.c.bf16 %v495_v57, %v490_v58 }
 0x207   : > { %664 = vst [vmem:[%s271_s13 + $0x8] sm:$0xff] %v662_v59  }
 0x208   : > { %945 = shalt.err (!%p942_p5)
}
 0x209   : > { %s946_s24 = scalar_lea.hbm %s1206_s17, 256  ;;  %s950_s10 = scalar_lea.hbm %s1253_s5, 1024 }
 0x20a   : > { %p947_p10 = scmp.ne.s32.totalorder %s1206_s17, %s946_s24  ;;  %p951_p4 = scmp.lt.s32.totalorder %s1206_s17, %s1253_s5 }
 0x20b   : > { %p952_p6 = scmp.lt.s32.totalorder %s950_s10, %s946_s24 }
 0x20c   : > { %p948_p9 = pnand %p947_p10, %p1270_p2 }
 0x20d   : > { %p953_p8 = por %p952_p6, %p951_p4 }
 0x20e   : > { %p949_p1 = pneg %p948_p9 }
 0x210   : > { %p954_p3 = pnand %p953_p8, %p949_p1 }
 0x212   : > { %957 = shalt.err (!%p954_p3)
}
 0x213   : > { %s1008_s7 = smov 64   ;;  %s1009_s28 = smov 4  }
 0x214   : > { %791 = dma.vmem_to_hbm [thread:$0]  (%p1270_p2), %s1201_s14, 256, %s1206_s17, %s519_s16, %s1008_s7, %s1008_s7, %s1009_s28  }
 0x215 PF: > { %p813_p7 = scmp.ge.s32.totalorder %s1000_s21, 2  ;;  %s547_s11 = sand.u32 1, %s988_s18  }
 0x216   : > { %p1271_p11 = scmp.ne.s32.totalorder %s1260_s25, 0  ;;  %s548_s8 = scalar_lea.sflag [#allocation4], %s547_s11 }
 0x218   : > { %p805_p12 = pnand %p813_p7, %p1271_p11 }
 0x21a   : > { %p806_p13 = pneg %p805_p12 }
 0x21c   : > { %983 = dma.done.wait (%p806_p13), %s548_s8, 256  }
 0x21d   : > { %985 = vsyncadd (%p806_p13), %s548_s8, 4294967040  ;;  %p19_p0 = scmp.ge.s32.totalorder %s1117_s15, 6   ;;  %s1272_s18 = smov %s992_s19 }
 0x21e   : > { %s1273_s19 = smov %s996_s20  ;;  %s1274_s20 = smov %s1133_s27 }
 0x21f   : > { %s1275_s21 = smov %s1117_s15  ;;  %21 = sbr.rel (!%p19_p0) target bundleno = 6 (0x6), region = 93 }
 0x224   :  { %553 = vsyncpa [#allocation3], 1 }
 0x225   :  { %555 = vsyncpa [#allocation3 + $0x1], 1 }
 0x226   :  { %556 = vsyncpa [#allocation6], 1 }
 0x227   :  { %557 = vsyncpa [#allocation4], 1 }
 0x228   :  { %559 = vsyncpa [#allocation4 + $0x1], 1 }

</bundles_post_ra>
